<compile_context>
chip_gen: v6e
topology: v6e:2x2x1
jax: 0.10.0
libtpu: 0.0.40
codegen_flags: <defaults>
</compile_context>

<pallas_src>
import jax
import jax.numpy as jnp
from jax.experimental import pallas as pl
from jax.experimental.pallas import tpu as pltpu


def _se_kernel(x_ref, xse_ref, w1_ref, b1_ref, w2_ref, b2_ref, o_ref):
    # x_ref, o_ref   : (C, tn)             VMEM tiles
    # xse_ref        : (C, tn) or (C, 1)   (pooled x_se case)
    # w1_ref, w2_ref : (C, C)              conv weights, (C_out, C_in)
    # b1_ref, b2_ref : (C, 1)              f32 biases
    xse = xse_ref[...]
    # conv_reduce: (C_out, C_in) @ (C_in, S) -> (C_out, S), f32 accumulation.
    h = jnp.dot(w1_ref[...], xse, preferred_element_type=jnp.float32)
    h = jnp.maximum(h + b1_ref[...], 0.0)                       # bias + ReLU (f32)
    # conv_expand
    g = jnp.dot(w2_ref[...], h.astype(w2_ref.dtype),
                preferred_element_type=jnp.float32)
    g = jax.nn.sigmoid(g + b2_ref[...])                         # bias + gate (f32)
    # Gate the main path; (C, 1) gate broadcasts over lanes when x_se is pooled.
    o_ref[...] = (x_ref[...].astype(jnp.float32) * g).astype(o_ref.dtype)


def _pick_spatial_tile(hw, c, n_streams, itemsize, *, tn_max=2048,
                       vmem_budget=20 * 1024 * 1024, resident_bytes=0):
    """Largest multiple-of-128 lane tile whose double-buffered streaming
    blocks (+ resident weights) fit a conservative VMEM budget (v7x-safe)."""
    per_lane = 2 * n_streams * c * itemsize              # x2: double buffering
    cap = (vmem_budget - resident_bytes) // max(per_lane, 1)
    cap = max(128, (cap // 128) * 128)
    hw_padded = ((hw + 127) // 128) * 128
    return max(128, min(tn_max, cap, hw_padded))


def se_layer(x, x_se, w_reduce, b_reduce, w_expand, b_expand, *, tn_max=2048):
    """SELayer forward.

    x: (N, C, H, W).  x_se: (N, C, H, W) or pooled (N, C, 1, 1).
    w_*: (C, C, 1, 1) conv weights.  b_*: (C,) biases.
    """
    N, C, H, W = x.shape
    HW = H * W
    pooled = x_se.shape == (N, C, 1, 1)
    if not pooled:
        assert x_se.shape == x.shape, (
            "x_se must be (N,C,H,W) matching x, or pooled (N,C,1,1)")

    param_dtype = x_se.dtype
    itemsize = x.dtype.itemsize
    p_itemsize = jnp.dtype(param_dtype).itemsize

    # Conv2d(out, in, 1, 1): y[o] = sum_i w[o, i] * xse[i] + b[o]
    # -> gate = W @ xse with channels on the sublane axis (no transpose needed).
    w1 = w_reduce[:, :, 0, 0].astype(param_dtype)         # (C_out, C_in)
    w2 = w_expand[:, :, 0, 0].astype(param_dtype)
    b1 = b_reduce.reshape(C, 1).astype(jnp.float32)
    b2 = b_expand.reshape(C, 1).astype(jnp.float32)

    n_streams = 2 if pooled else 3                         # x, out [, x_se]
    resident = 2 * 2 * C * C * p_itemsize                  # both weights, 2 bufs
    tn = _pick_spatial_tile(HW, C, n_streams, itemsize,
                            tn_max=tn_max, resident_bytes=resident)
    hw_p = ((HW + tn - 1) // tn) * tn                      # lane-dense padding

    xf = x.reshape(N, C, HW)
    sf = x_se.reshape(N, C, 1) if pooled else x_se.reshape(N, C, HW)
    if hw_p != HW:
        xf = jnp.pad(xf, ((0, 0), (0, 0), (0, hw_p - HW)))
        if not pooled:
            sf = jnp.pad(sf, ((0, 0), (0, 0), (0, hw_p - HW)))

    grid = (N, hw_p // tn)

    x_spec = pl.BlockSpec((None, C, tn), lambda n, s: (n, 0, s))
    if pooled:
        se_spec = pl.BlockSpec((None, C, 1), lambda n, s: (n, 0, 0))
    else:
        se_spec = pl.BlockSpec((None, C, tn), lambda n, s: (n, 0, s))
    # Constant index_maps -> these blocks stay resident across the grid
    # (no per-step re-DMA).
    w_spec = pl.BlockSpec((C, C), lambda n, s: (0, 0))
    b_spec = pl.BlockSpec((C, 1), lambda n, s: (0, 0))

    s_se = 1 if pooled else HW
    cost = pl.CostEstimate(
        flops=int(4 * N * s_se * C * C + 2 * N * HW * C),
        transcendentals=int(N * s_se * C),
        bytes_accessed=int((xf.size + sf.size + N * C * hw_p) * itemsize
                           + (w1.size + w2.size) * p_itemsize
                           + (b1.size + b2.size) * 4),
    )

    out_flat = pl.pallas_call(
        _se_kernel,
        out_shape=jax.ShapeDtypeStruct((N, C, hw_p), x.dtype),
        grid=grid,
        in_specs=[x_spec, se_spec, w_spec, b_spec, w_spec, b_spec],
        out_specs=pl.BlockSpec((None, C, tn), lambda n, s: (n, 0, s)),
        compiler_params=pltpu.CompilerParams(
            dimension_semantics=("parallel", "parallel")),
        cost_estimate=cost,
    )(xf, sf, w1, b1, w2, b2)

    if hw_p != HW:
        out_flat = out_flat[:, :, :HW]
    return out_flat.reshape(N, C, H, W)


def se_layer_ref(x, x_se, w_reduce, b_reduce, w_expand, b_expand):
    """Pure-JAX reference (NCHW, same math as the PyTorch module)."""
    w1 = w_reduce[:, :, 0, 0]
    w2 = w_expand[:, :, 0, 0]
    h = jnp.einsum('oc,nchw->nohw', w1, x_se) + b_reduce[None, :, None, None]
    h = jnp.maximum(h, 0.0)
    g = jnp.einsum('oc,nchw->nohw', w2, h) + b_expand[None, :, None, None]
    return x * jax.nn.sigmoid(g)


if __name__ == "__main__":
    N, C, H, W = 2, 4, 16, 16
    key = jax.random.PRNGKey(0)
    k1, k2, k3, k4, k5, k6, k7 = jax.random.split(key, 7)

    x = jax.random.normal(k1, (N, C, H, W), dtype=jnp.float32)
    x_se = jax.random.normal(k2, (N, C, H, W), dtype=jnp.float32)

    # Deterministic parameter init (shapes from nn.Conv2d(C, C, 1, bias=True)).
    w_reduce = jax.random.normal(k3, (C, C, 1, 1), dtype=jnp.float32) * 0.5
    b_reduce = jax.random.normal(k4, (C,), dtype=jnp.float32) * 0.1
    w_expand = jax.random.normal(k5, (C, C, 1, 1), dtype=jnp.float32) * 0.5
    b_expand = jax.random.normal(k6, (C,), dtype=jnp.float32) * 0.1

    # Full-resolution x_se (exact signature of the PyTorch forward).
    out = jax.block_until_ready(
        se_layer(x, x_se, w_reduce, b_reduce, w_expand, b_expand))
    ref = se_layer_ref(x, x_se, w_reduce, b_reduce, w_expand, b_expand)
    assert out.shape == (N, C, H, W)
    assert jnp.allclose(out, ref, atol=1e-5, rtol=1e-5), "mismatch vs reference"

    # Pooled x_se (typical SE usage): gate computed once per sample inside the
    # kernel, never broadcast to (N, C, H, W) in HBM.
    x_se_pooled = jax.random.normal(k7, (N, C, 1, 1), dtype=jnp.float32)
    out_p = jax.block_until_ready(
        se_layer(x, x_se_pooled, w_reduce, b_reduce, w_expand, b_expand))
    ref_p = se_layer_ref(x, x_se_pooled, w_reduce, b_reduce, w_expand, b_expand)
    assert jnp.allclose(out_p, ref_p, atol=1e-5, rtol=1e-5), "pooled mismatch"

    print("KERNEL_OK")
</pallas_src>

<mosaic_0001>
module attributes {stable_mosaic.version = 11 : i64} {
  func.func @_se_kernel(%arg0: i32, %arg1: i32, %arg2: memref<1x4x256xf32, #tpu.memory_space<vmem>>, %arg3: memref<1x4x256xf32, #tpu.memory_space<vmem>>, %arg4: memref<4x4xf32, #tpu.memory_space<vmem>>, %arg5: memref<4x1xf32, #tpu.memory_space<vmem>>, %arg6: memref<4x4xf32, #tpu.memory_space<vmem>>, %arg7: memref<4x1xf32, #tpu.memory_space<vmem>>, %arg8: memref<1x4x256xf32, #tpu.memory_space<vmem>>) attributes {dimension_semantics = [#tpu.dimension_semantics<parallel>, #tpu.dimension_semantics<parallel>], iteration_bounds = array<i64: 2, 1>, scalar_prefetch = 0 : i64, scratch_operands = 0 : i64, tpu.core_type = #tpu.core_type<tc>, window_params = [{transform_indices = @transform_0, window_bounds = array<i64: 1, 4, 256>}, {transform_indices = @transform_1, window_bounds = array<i64: 1, 4, 256>}, {pipeline_mode = #tpu.pipeline_mode<synchronous>, transform_indices = @transform_2, window_bounds = array<i64: 4, 4>}, {pipeline_mode = #tpu.pipeline_mode<synchronous>, transform_indices = @transform_3, window_bounds = array<i64: 4, 1>}, {pipeline_mode = #tpu.pipeline_mode<synchronous>, transform_indices = @transform_4, window_bounds = array<i64: 4, 4>}, {pipeline_mode = #tpu.pipeline_mode<synchronous>, transform_indices = @transform_5, window_bounds = array<i64: 4, 1>}, {transform_indices = @transform_6, window_bounds = array<i64: 1, 4, 256>}]} {
    %c0 = arith.constant 0 : index
    %c0_0 = arith.constant 0 : index
    %c0_1 = arith.constant 0 : index
    %0 = vector.load %arg3[%c0, %c0_0, %c0_1] : memref<1x4x256xf32, #tpu.memory_space<vmem>>, vector<1x4x256xf32>
    %1 = vector.shape_cast %0 : vector<1x4x256xf32> to vector<4x256xf32>
    %c0_2 = arith.constant 0 : index
    %c0_3 = arith.constant 0 : index
    %2 = vector.load %arg4[%c0_2, %c0_3] : memref<4x4xf32, #tpu.memory_space<vmem>>, vector<4x4xf32>
    %cst = arith.constant dense<0.000000e+00> : vector<4x256xf32>
    %3 = tpu.matmul %2, %1, %cst {dimension_numbers = #tpu.dot_dimension_numbers<[1], [0], [0], [1], [0, 0, 1, 1], [], []>} : vector<4x4xf32>, vector<4x256xf32>, vector<4x256xf32> -> vector<4x256xf32>
    %c0_4 = arith.constant 0 : index
    %c0_5 = arith.constant 0 : index
    %4 = vector.load %arg5[%c0_4, %c0_5] : memref<4x1xf32, #tpu.memory_space<vmem>>, vector<4x1xf32>
    %5 = vector.broadcast %4 : vector<4x1xf32> to vector<4x256xf32>
    %6 = arith.addf %3, %5 : vector<4x256xf32>
    %cst_6 = arith.constant 0.000000e+00 : f32
    %7 = vector.broadcast %cst_6 : f32 to vector<4x256xf32>
    %8 = arith.maximumf %6, %7 : vector<4x256xf32>
    %c0_7 = arith.constant 0 : index
    %c0_8 = arith.constant 0 : index
    %9 = vector.load %arg6[%c0_7, %c0_8] : memref<4x4xf32, #tpu.memory_space<vmem>>, vector<4x4xf32>
    %cst_9 = arith.constant dense<0.000000e+00> : vector<4x256xf32>
    %10 = tpu.matmul %9, %8, %cst_9 {dimension_numbers = #tpu.dot_dimension_numbers<[1], [0], [0], [1], [0, 0, 1, 1], [], []>} : vector<4x4xf32>, vector<4x256xf32>, vector<4x256xf32> -> vector<4x256xf32>
    %c0_10 = arith.constant 0 : index
    %c0_11 = arith.constant 0 : index
    %11 = vector.load %arg7[%c0_10, %c0_11] : memref<4x1xf32, #tpu.memory_space<vmem>>, vector<4x1xf32>
    %12 = vector.broadcast %11 : vector<4x1xf32> to vector<4x256xf32>
    %13 = arith.addf %10, %12 : vector<4x256xf32>
    %14 = arith.negf %13 : vector<4x256xf32>
    %15 = math.exp %14 : vector<4x256xf32>
    %cst_12 = arith.constant 1.000000e+00 : f32
    %16 = vector.broadcast %cst_12 : f32 to vector<4x256xf32>
    %17 = arith.addf %16, %15 : vector<4x256xf32>
    %18 = arith.divf %16, %17 : vector<4x256xf32>
    %c0_13 = arith.constant 0 : index
    %c0_14 = arith.constant 0 : index
    %c0_15 = arith.constant 0 : index
    %19 = vector.load %arg2[%c0_13, %c0_14, %c0_15] : memref<1x4x256xf32, #tpu.memory_space<vmem>>, vector<1x4x256xf32>
    %20 = vector.shape_cast %19 : vector<1x4x256xf32> to vector<4x256xf32>
    %21 = arith.mulf %20, %18 : vector<4x256xf32>
    %c0_16 = arith.constant 0 : index
    %c0_17 = arith.constant 0 : index
    %c0_18 = arith.constant 0 : index
    %22 = vector.load %arg8[%c0_16, %c0_17, %c0_18] : memref<1x4x256xf32, #tpu.memory_space<vmem>>, vector<1x4x256xf32>
    %23 = vector.shape_cast %22 : vector<1x4x256xf32> to vector<4x256xf32>
    %24 = vector.shape_cast %21 : vector<4x256xf32> to vector<1x4x256xf32>
    tpu.vector_store %arg8[%c0_16, %c0_17, %c0_18], %24 {strides = array<i32>} : memref<1x4x256xf32, #tpu.memory_space<vmem>>, vector<1x4x256xf32>,
    return
  }
  func.func @transform_0(%arg0: i32, %arg1: i32) -> (i32, i32, i32) {
    %c0_i32 = arith.constant 0 : i32
    %c0_i32_0 = arith.constant 0 : i32
    return %arg0, %c0_i32, %arg1 : i32, i32, i32
  }
  func.func @transform_1(%arg0: i32, %arg1: i32) -> (i32, i32, i32) {
    %c0_i32 = arith.constant 0 : i32
    %c0_i32_0 = arith.constant 0 : i32
    return %arg0, %c0_i32, %arg1 : i32, i32, i32
  }
  func.func @transform_2(%arg0: i32, %arg1: i32) -> (i32, i32) {
    %c0_i32 = arith.constant 0 : i32
    %c0_i32_0 = arith.constant 0 : i32
    %c0_i32_1 = arith.constant 0 : i32
    return %c0_i32, %c0_i32_0 : i32, i32
  }
  func.func @transform_3(%arg0: i32, %arg1: i32) -> (i32, i32) {
    %c0_i32 = arith.constant 0 : i32
    %c0_i32_0 = arith.constant 0 : i32
    %c0_i32_1 = arith.constant 0 : i32
    return %c0_i32, %c0_i32_0 : i32, i32
  }
  func.func @transform_4(%arg0: i32, %arg1: i32) -> (i32, i32) {
    %c0_i32 = arith.constant 0 : i32
    %c0_i32_0 = arith.constant 0 : i32
    %c0_i32_1 = arith.constant 0 : i32
    return %c0_i32, %c0_i32_0 : i32, i32
  }
  func.func @transform_5(%arg0: i32, %arg1: i32) -> (i32, i32) {
    %c0_i32 = arith.constant 0 : i32
    %c0_i32_0 = arith.constant 0 : i32
    %c0_i32_1 = arith.constant 0 : i32
    return %c0_i32, %c0_i32_0 : i32, i32
  }
  func.func @transform_6(%arg0: i32, %arg1: i32) -> (i32, i32, i32) {
    %c0_i32 = arith.constant 0 : i32
    %c0_i32_0 = arith.constant 0 : i32
    return %arg0, %c0_i32, %arg1 : i32, i32, i32
  }
}

</mosaic_0001>

<bundles_post_ra>
// kernel: tpu_custom_call.1
= control target key start
LH: loop header
LB: loop body
LE: loop exit
PB: predicated region body
PF: predicated region fallthrough
CT: control target
= control target key end

     0   :  { %s1133_s0 = inlined_call_operand.hbm [shape: f32[2,4,256], index: 0, kind: input, shape index: {}]   ;;  %s1134_s1 = inlined_call_operand.hbm [shape: f32[2,4,256], index: 1, kind: input, shape index: {}]   ;;  %s1135_s2 = inlined_call_operand.vmem [shape: f32[4,4], index: 2, kind: input, shape index: {}]   ;;  %s1136_s3 = inlined_call_operand.vmem [shape: f32[4,1], index: 3, kind: input, shape index: {}]   ;;  %s1137_s4 = inlined_call_operand.vmem [shape: f32[4,4], index: 4, kind: input, shape index: {}]   ;;  %s1138_s5 = inlined_call_operand.vmem [shape: f32[4,1], index: 5, kind: input, shape index: {}]   ;;  %s1139_s6 = inlined_call_operand.hbm [shape: f32[2,4,256], index: 6, kind: output, shape index: {}]  }
   0x1   :  { %1141 = sst [smem:[#allocation12_spill]] %s1133_s0 }
   0x2   :  { %11 = vsyncpa [#allocation3], 0 }
   0x3   :  { %13 = vsyncpa [#allocation3 + $0x1], 0 }
   0x4   :  { %14 = vsyncpa [#allocation6], 0 }
   0x5   :  { %16 = vsyncpa [#allocation6 + $0x1], 0 }
   0x6   :  { %17 = vsyncpa [#allocation4], 0 }
   0x7   :  { %19 = vsyncpa [#allocation4 + $0x1], 0  ;;  %s947_s21 = smov 0   ;;  %s949_s22 = smov 0  }
   0x8   :  { %s951_s23 = smov 0   ;;  %s953_s24 = smov 0  }
   0x9   :  { %s955_s25 = smov 0   ;;  %s957_s26 = smov 0  }
   0xa LB: > { %s656_s27 = sadd.s32 4294967295, %s905_s26   ;;  %s657_s28 = sadd.s32 4294967294, %s905_s26   ;;  %s905_s26 = sphi %s957_s26, %s25_s26   ;;  %s901_s25 = sphi %s955_s25, %s1156_s25   ;;  %s897_s24 = sphi %s953_s24, %s1155_s24   ;;  %s893_s23 = sphi %s951_s23, %s1154_s23   ;;  %s889_s22 = sphi %s949_s22, %s1153_s22   ;;  %s885_s21 = sphi %s947_s21, %s1152_s21  }
   0xb   : > { %s37_s29 = sadd.s32 1, %s901_s25  ;;  %s46_s30 = sadd.s32 1, %s893_s23 }
   0xc   : > { %p39_p0 = scmp.ge.s32.totalorder %s37_s29, 2  ;;  %p53_p1 = scmp.ne.s32.totalorder %s893_s23, %s889_s22 }
   0xd   : > { %p54_p2 = scmp.eq.s32.totalorder %s905_s26, 0  ;;  %p59_p3 = scmp.ne.s32.totalorder %s889_s22, %s885_s21 }
   0xe   : > { %s1158_s29 = smov (%p39_p0, %s37_s29), 0  ;;  %p60_p5 = scmp.eq.s32.totalorder %s656_s27, 0 }
   0xf   : > { %1142 = sst [smem:[#allocation11_spill]] %s1158_s29  ;;  %p988_p4 = por %p54_p2, %p53_p1 }
  0x10   : > { %s41_s8 = ssub.s32 %s901_s25, %s1158_s29  ;;  %p197_p6 = scmp.eq.s32.totalorder %s656_s27, 1 }
  0x11   : > { %p44_p7 = scmp.eq.s32.totalorder %s41_s8, 0  ;;  %p994_p8 = por %p60_p5, %p59_p3 }
  0x12   : > { %p998_p9 = por %p197_p6, %p53_p1  ;;  %p203_p10 = scmp.eq.s32.totalorder %s657_s28, 1 }
  0x13   : > { %s1003_s11 = scalar_select %p44_p7, %s893_s23, %s46_s30  }
  0x14   : > { %p1005_p11 = por %p203_p10, %p59_p3  ;;  %p703_p13 = scmp.lt.s32.totalorder %s905_s26, 2 }
  0x15   : > { %s1012_s13 = sand.u32 1, %s893_s23   ;;  %s683_s15 = sshll.u32 %s901_s25, 7 }
  0x16   : > { %s660_s14 = sshll.u32 %s1012_s13, 3  ;;  %s1147_s0 = sld [smem:[#allocation12_spill]] }
  0x17   : > { %s239_s19 = scalar_lea.vmem [#allocation2], %s660_s14  ;;  %p1021_p0 = pnand %p703_p13, %p988_p4 }
  0x18   : > { %s249_s20 = sshll.u32 %s239_s19, 4  ;;  %p666_p1 = scmp.ge.s32.totalorder %s905_s26, 1  ;;  %s250_s20 = int_to_ptr.vmem [resolvable:$true] %s249_s20 }
  0x19   : > { %p275_p2 = scmp.lt.s32.totalorder %s905_s26, 3  ;;  %s236_s28 = scalar_lea.sflag [#allocation3], %s1012_s13 }
  0x1a   : > { %p767_p3 = pneg %p1021_p0  ;;  %s778_s30 = scalar_lea.vmem %s250_s20, 128 }
  0x1b   : > { %p779_p5 = scmp.ne.s32.totalorder %s250_s20, %s778_s30  ;;  %s907_s8 = smov [#allocation2]  }
  0x1c   : > { %s247_s18 = scalar_lea.hbm %s1147_s0, %s683_s15  ;;  %s783_s16 = sshll.u32 %s907_s8, 4  ;;  %s784_s16 = int_to_ptr.vmem [resolvable:$false] %s783_s16 }
  0x1d   : > { %p781_p6 = pnand %p779_p5, %p767_p3  ;;  %s785_s7 = scalar_lea.vmem %s784_s16, 256 }
  0x1e   : > { %p786_p4 = scmp.lt.s32.totalorder %s250_s20, %s784_s16  ;;  %p787_p10 = scmp.lt.s32.totalorder %s785_s7, %s778_s30 }
  0x1f   : > { %p782_p7 = pneg %p781_p6 }
  0x20   : > { %p788_p13 = por %p787_p10, %p786_p4 }
  0x22   : > { %p789_p12 = pnand %p788_p13, %p782_p7 }
  0x24   : > { %792 = shalt.err (!%p789_p12)
}
  0x25   : > { %695 = dma.hbm_to_vmem [thread:$0]  (!%p1021_p0), %s247_s18, 128, %s250_s20, %s236_s28  }
  0x26   : > { %p1039_p5 = pnand %p666_p1, %p275_p2  ;;  %s268_s30 = scalar_lea.hbm %s1134_s1, %s683_s15 }
  0x27   : > { %s260_s16 = scalar_lea.vmem [#allocation5], %s660_s14  ;;  %s257_s0 = scalar_lea.sflag [#allocation6], %s1012_s13 }
  0x28   : > { %s270_s7 = sshll.u32 %s260_s16, 4  ;;  %s908_s18 = smov [#allocation5]   ;;  %s271_s7 = int_to_ptr.vmem [resolvable:$true] %s270_s7 }
  0x29   : > { %s806_s29 = scalar_lea.vmem %s271_s7, 128  ;;  %s811_s20 = sshll.u32 %s908_s18, 4  ;;  %s812_s20 = int_to_ptr.vmem [resolvable:$false] %s811_s20 }
  0x2a   : > { %p807_p12 = scmp.ne.s32.totalorder %s271_s7, %s806_s29  ;;  %s813_s28 = scalar_lea.vmem %s812_s20, 256 }
  0x2b   : > { %p814_p1 = scmp.lt.s32.totalorder %s271_s7, %s812_s20  ;;  %p815_p2 = scmp.lt.s32.totalorder %s813_s28, %s806_s29 }
  0x2c   : > { %p809_p6 = pnand %p807_p12, %p767_p3 }
  0x2d   : > { %p816_p4 = por %p815_p2, %p814_p1 }
  0x2e   : > { %p810_p7 = pneg %p809_p6 }
  0x30   : > { %p817_p10 = pnand %p816_p4, %p810_p7 }
  0x32   : > { %820 = shalt.err (!%p817_p10)
}
  0x33   : > { %698 = dma.hbm_to_vmem [thread:$0]  (!%p1021_p0), %s268_s30, 128, %s271_s7, %s257_s0  }
  0x34   : > { %279 = sbr.rel (%p1039_p5) target bundleno = 512 (0x200), region = 44  ;;  %s1055_s13 = sand.u32 (!%p1039_p5), 1, %s889_s22  }
  0x35   : > { %s1058_s14 = sshll.u32 (!%p1039_p5), %s1055_s13, 3  ;;  %s282_s15 = scalar_lea.sflag (!%p1039_p5), [#allocation3], %s1055_s13 }
  0x36   : > { %s285_s29 = scalar_lea.vmem (!%p1039_p5), [#allocation2], %s1058_s14 }
  0x39   : > { %872 = dma.done.wait (%p994_p8), %s282_s15, 128  }
  0x3a   : > { %874 = vsyncadd (%p994_p8), %s282_s15, 4294967168  ;;  %s291_s0 = scalar_lea.sflag [#allocation6], %s1055_s13  ;;  %s294_s27 = scalar_lea.vmem [#allocation5], %s1058_s14 }
  0x3b   : > { %876 = dma.done.wait (%p994_p8), %s291_s0, 128  }
  0x3c   : > { %878 = vsyncadd (%p994_p8), %s291_s0, 4294967168  ;;  %v909_v0 = vmov 0.0   ;;  %v910_v1 = vmov 0   ;;  %v331_v2 = vld [vmem:[%s294_s27] sm:$0xff]  ;;  %vm345_vm0 = vcmask 1043456   ;;  %vm341_vm1 = vcmask 31744  }
  0x3d   : > { %414 = vmatprep.mubr.f32.mxu0 %v909_v0  ;;  %755 = vset.pattern.permute.xlu0 %v910_v1  ;;  %v333_v3 = vld [vmem:[%s1136_s3] sm:$0xf]  ;;  %v340_v4 = vcombine.high %v331_v2, %v331_v2  ;;  %s685_s20 = sshll.u32 %s897_s24, 7  ;;  %s327_s28 = scalar_lea.vmem [#allocation7], %s1058_s14 }
  0x3e   : > { %503 = vmatprep.mubr.f32.mxu1 %v909_v0  ;;  %336 = vperm.xlu0 %755, %v333_v3   ;;  %v332_v5 = vld [vmem:[%s1135_s2] sm:$0xf]  ;;  %s546_s15 = sshll.u32 %s327_s28, 4  ;;  %s544_s17 = scalar_lea.hbm %s1139_s6, %s685_s20  ;;  %s547_s15 = int_to_ptr.vmem [resolvable:$true] %s546_s15 }
  0x3f   : > { %v424_v6 = vld [vmem:[%s1138_s5] sm:$0xf]  ;;  %670 = vmatprep.subr.msk.mxu0 %vm345_vm0, %v340_v4  ;;  %s530_s19 = scalar_lea.sflag [#allocation4], %s1055_s13  ;;  %s821_s8 = scalar_lea.vmem %s547_s15, 128 }
  0x40   : > { %671 = vmatpush1.msk.msra.mxu0 %vm345_vm0, %v331_v2  ;;  %v423_v14 = vld [vmem:[%s1137_s4] sm:$0xf]  ;;  %p822_p8 = scmp.ne.s32.totalorder %s547_s15, %s821_s8  ;;  %s911_s30 = smov [#allocation7]  }
  0x41   : > { %672 = vmatmul.mubr.msk.f32.vlgmr.msra.gmra.mxu0 %vm341_vm1, %v332_v5  ;;  %v522_v28 = vld [vmem:[%s285_s29] sm:$0xff]  ;;  %s825_s9 = sshll.u32 %s911_s30, 4  ;;  %s826_s9 = int_to_ptr.vmem [resolvable:$false] %s825_s9 }
  0x42   : > { %427 = vperm.xlu0 %755, %v424_v6   ;;  %p823_p0 = pnand %p822_p8, %p998_p9  ;;  %s827_s24 = scalar_lea.vmem %s826_s9, 256 }
  0x43   : > { %p828_p13 = scmp.lt.s32.totalorder %s547_s15, %s826_s9  ;;  %p829_p5 = scmp.lt.s32.totalorder %s827_s24, %s821_s8 }
  0x44   : > { %p824_p3 = pneg %p823_p0 }
  0x45   : > { %p830_p12 = por %p829_p5, %p828_p13 }
  0x47   : > { %p831_p6 = pnand %p830_p12, %p824_p3 }
  0xb9   : > { %v337_v8 = vpop.permute.xlu0 %336 }
  0xbd   : > { %v428_v15 = vpop.permute.xlu0 %427 }
 0x101   : > { %v416_v7 = vpop.f32.mrf.mxu0 }
 0x102   : > { %v417_v9 = vadd.f32 %v416_v7, %v337_v8 }
 0x103   : > { %v418_v10 = vpop.f32.mrf.mxu0 }
 0x104   : > { %v419_v11 = vadd.f32 %v418_v10, %v337_v8  ;;  %v421_v13 = vmax.f32 %v417_v9, 0.0 }
 0x106   : > { %v422_v12 = vmax.f32 %v419_v11, 0.0 }
 0x108   : > { %673 = vmatprep.subr.msk.mxu1 %vm345_vm0, %v422_v12 }
 0x109   : > { %674 = vmatpush1.msk.msra.mxu1 %vm345_vm0, %v421_v13 }
 0x10a   : > { %675 = vmatmul.mubr.msk.f32.vlgmr.msra.gmra.mxu1 %vm341_vm1, %v423_v14 }
 0x1ca   : > { %v505_v16 = vpop.f32.mrf.mxu1 }
 0x1cb   : > { %v506_v17 = vadd.f32 %v505_v16, %v428_v15 }
 0x1cc   : > { %v507_v18 = vpop.f32.mrf.mxu1 }
 0x1cd   : > { %v676_v19 = vmul.f32 -1.442695, %v506_v17  ;;  %v508_v20 = vadd.f32 %v507_v18, %v428_v15 }
 0x1cf   : > { %757 = vpow2.f32 %v676_v19  ;;  %v677_v21 = vmul.f32 -1.442695, %v508_v20 }
 0x1d1   : > { %759 = vpow2.f32 %v677_v21 }
 0x1dc   : > { %v758_v22 = vpop.eup %757 }
 0x1dd   : > { %v516_v23 = vadd.f32 1.0, %v758_v22 }
 0x1de   : > { %v760_v24 = vpop.eup %759 }
 0x1df   : > { %v517_v25 = vadd.f32 1.0, %v760_v24  ;;  %761 = vrcp.f32 %v516_v23 }
 0x1e1   : > { %763 = vrcp.f32 %v517_v25 }
 0x1ec   : > { %v762_v26 = vpop.eup %761 }
 0x1ee   : > { %v764_v27 = vpop.eup %763 }
 0x1ef   : > { %v525_v29 = vcombine.low %v762_v26, %v764_v27 }
 0x1f1   : > { %v527_v30 = vmul.f32 %v525_v29, %v522_v28 }
 0x1f3   : > { %528 = vst [vmem:[%s327_s28] sm:$0xff] %v527_v30 }
 0x1f4   : > { %834 = shalt.err (!%p831_p6)
}
 0x1f5   : > { %s835_s14 = scalar_lea.hbm %s544_s17, 128  ;;  %s839_s16 = scalar_lea.hbm %s1139_s6, 256 }
 0x1f6   : > { %p836_p7 = scmp.ne.s32.totalorder %s544_s17, %s835_s14  ;;  %p840_p4 = scmp.lt.s32.totalorder %s544_s17, %s1139_s6 }
 0x1f7   : > { %p841_p10 = scmp.lt.s32.totalorder %s839_s16, %s835_s14 }
 0x1f8   : > { %p837_p1 = pnand %p836_p7, %p998_p9 }
 0x1f9   : > { %p842_p8 = por %p841_p10, %p840_p4 }
 0x1fa   : > { %p838_p2 = pneg %p837_p1 }
 0x1fc   : > { %p843_p0 = pnand %p842_p8, %p838_p2 }
 0x1fe   : > { %846 = shalt.err (!%p843_p0)
}
 0x1ff   : > { %690 = dma.vmem_to_hbm [thread:$0]  (%p998_p9), %s547_s15, 128, %s544_s17, %s530_s19  }
 0x200 PF: > { %s558_s20 = sand.u32 1, %s885_s21   ;;  %p1150_p3 = scmp.ge.s32.totalorder %s905_s26, 2 }
 0x201   : > { %s559_s28 = scalar_lea.sflag [#allocation4], %s558_s20 }
 0x202   : > { %p700_p13 = pnand %p1150_p3, %p1005_p11 }
 0x204   : > { %p701_p5 = pneg %p700_p13 }
 0x206   : > { %880 = dma.done.wait (%p701_p5), %s559_s28, 128  }
 0x207   : > { %882 = vsyncadd (%p701_p5), %s559_s28, 4294967168  ;;  %s25_s26 = sadd.s32 1, %s905_s26   ;;  %s1151_s10 = sld [smem:[#allocation11_spill]] }
 0x208   : > { %p22_p12 = scmp.ge.s32.totalorder %s25_s26, 4   ;;  %s1152_s21 = smov %s889_s22 }
 0x209   : > { %s1153_s22 = smov %s893_s23  ;;  %s1154_s23 = smov %s1003_s11 }
 0x20a   : > { %s1155_s24 = smov %s901_s25  ;;  %24 = sbr.rel (!%p22_p12) target bundleno = 10 (0xa), region = 102 }
 0x20d   : > { %s1156_s25 = smov %s1151_s10 }
 0x20f   :  { %564 = vsyncpa [#allocation3], 1 }
 0x210   :  { %566 = vsyncpa [#allocation3 + $0x1], 1 }
 0x211   :  { %567 = vsyncpa [#allocation6], 1 }
 0x212   :  { %569 = vsyncpa [#allocation6 + $0x1], 1 }
 0x213   :  { %570 = vsyncpa [#allocation4], 1 }
 0x214   :  { %572 = vsyncpa [#allocation4 + $0x1], 1 }

</bundles_post_ra>
